<compile_context>
chip_gen: v6e
topology: v6e:2x2x1
jax: 0.10.0
libtpu: 0.0.40
codegen_flags: <defaults>
</compile_context>

<pallas_src>
import jax
import jax.numpy as jnp
from jax.experimental import pallas as pl
from jax.experimental.pallas import tpu as pltpu


def _round_up(x, m):
    return ((x + m - 1) // m) * m


def _budget():
    """Per-generation (vmem_limit_bytes, edge-tile target, node-tile target)."""
    try:
        cap = pltpu.get_tpu_info().vmem_capacity_bytes
    except Exception:
        cap = None
    if cap is not None and cap >= 96 * 1024 * 1024:      # v5e / v6e: 128 MiB physical
        return min(100 * 1024 * 1024, cap * 3 // 4), 1024, 512
    return 32 * 1024 * 1024, 256, 256                     # v7x (64 MiB) / unknown


_VMEM_LIMIT, _EDGE_TILE_TARGET, _NODE_TILE_TARGET = _budget()


def _cparams(semantics):
    return pltpu.CompilerParams(dimension_semantics=semantics,
                                vmem_limit_bytes=_VMEM_LIMIT)


def _mm(a, b):
    # a [M, K] @ b [K, N] on the MXU, f32 accumulation.
    return jax.lax.dot_general(a, b, (((1,), (0,)), ((), ())),
                               preferred_element_type=jnp.float32)


def _mtm(a, b):
    # a.T @ b, contraction on axis 0 (the edge axis) -> scatter-add without
    # materializing any transpose.
    return jax.lax.dot_general(a, b, (((0,), (0,)), ((), ())),
                               preferred_element_type=jnp.float32)


def _onehot(idx, width, offset):
    # (rows, width) bf16 one-hot mask built in VMEM from a (rows, 1) int32 index
    # column (pure VPU: iota + compare + select).  Out-of-range / -1 padded
    # indices give all-zero rows, so padded edges contribute nothing.
    rows = idx.shape[0]
    cols = jax.lax.broadcasted_iota(jnp.int32, (rows, width), 1)
    return jnp.where(cols == (idx - offset), 1.0, 0.0).astype(jnp.bfloat16)


# ----------------------------------------------------------------------------
# feat_project:  h = x @ W + b   (row-tiled, "parallel")
# ----------------------------------------------------------------------------
def _feat_project_kernel(x_ref, w_ref, b_ref, o_ref):
    y = _mm(x_ref[...].astype(jnp.bfloat16), w_ref[...]) + b_ref[...]
    o_ref[...] = y.astype(o_ref.dtype)


def feat_project(x, w, b, *, tn):
    n, din = x.shape
    dout = w.shape[1]
    return pl.pallas_call(
        _feat_project_kernel,
        out_shape=jax.ShapeDtypeStruct((n, dout), jnp.bfloat16),
        grid_spec=pltpu.PrefetchScalarGridSpec(
            num_scalar_prefetch=0,
            grid=(n // tn,),
            in_specs=[pl.BlockSpec((tn, din), lambda i: (i, 0)),
                      pl.BlockSpec((din, dout), lambda i: (0, 0)),
                      pl.BlockSpec((1, dout), lambda i: (0, 0))],
            out_specs=pl.BlockSpec((tn, dout), lambda i: (i, 0)),
        ),
        compiler_params=_cparams(("parallel",)),
    )(x, w, b)


# ----------------------------------------------------------------------------
# fused classifier head:  logits = relu(h @ W1 + b1) @ W2 + b2   (row-tiled)
# ----------------------------------------------------------------------------
def _classifier_kernel(h_ref, w1_ref, b1_ref, w2_ref, b2_ref, o_ref):
    z = _mm(h_ref[...], w1_ref[...]) + b1_ref[...]
    z = jnp.maximum(z, 0.0)
    o_ref[...] = (_mm(z.astype(jnp.bfloat16), w2_ref[...]) + b2_ref[...]).astype(o_ref.dtype)


def classifier_head(h, w1, b1, w2, b2, *, tn):
    n, dh = h.shape
    dmid = w1.shape[1]
    c = w2.shape[1]
    return pl.pallas_call(
        _classifier_kernel,
        out_shape=jax.ShapeDtypeStruct((n, c), jnp.float32),
        grid_spec=pltpu.PrefetchScalarGridSpec(
            num_scalar_prefetch=0,
            grid=(n // tn,),
            in_specs=[pl.BlockSpec((tn, dh), lambda i: (i, 0)),
                      pl.BlockSpec((dh, dmid), lambda i: (0, 0)),
                      pl.BlockSpec((1, dmid), lambda i: (0, 0)),
                      pl.BlockSpec((dmid, c), lambda i: (0, 0)),
                      pl.BlockSpec((1, c), lambda i: (0, 0))],
            out_specs=pl.BlockSpec((tn, c), lambda i: (i, 0)),
        ),
        compiler_params=_cparams(("parallel",)),
    )(h, w1, b1, w2, b2)


# ----------------------------------------------------------------------------
# Layer pass A: time encoding + mean message aggregation.
# Grid: (node tiles "parallel", edge tiles "arbitrary").  Pure streaming
# scatter-accumulate into a node-tiled f32 VMEM accumulator.
# ----------------------------------------------------------------------------
def _tgat_aggregate_kernel(h_ref, src_ref, dst_ref, t_ref, invdeg_ref,
                           wt_ref, bt_ref, agg_ref, acc_ref):
    i = pl.program_id(0)                       # node tile
    j = pl.program_id(1)                       # edge tile (reduction)
    tn = acc_ref.shape[0]
    n_all = h_ref.shape[0]

    @pl.when(j == 0)
    def _init():
        acc_ref[...] = jnp.zeros_like(acc_ref)

    # TimeEncoding cos(t*w + b): rank-1 VPU/EUP broadcast, no MXU.
    time_emb = jnp.cos(t_ref[...] * wt_ref[...] + bt_ref[...])        # (te, Td) f32

    s_oh = _onehot(src_ref[...], n_all, 0)                            # (te, N)  gather mask
    d_oh = _onehot(dst_ref[...], tn, i * tn)                          # (te, tn) scatter mask

    h_src = _mm(s_oh, h_ref[...])                                     # (te, Din) f32
    msg = jnp.concatenate([h_src, time_emb], axis=1).astype(jnp.bfloat16)
    acc_ref[...] += _mtm(d_oh, msg)                                   # fused (tn, Din+Td) scatter

    @pl.when(j == pl.num_programs(1) - 1)
    def _finalize():
        # mean over in-edges; zero in-degree nodes stay 0 (matches DGL update_all)
        agg_ref[...] = (acc_ref[...] * invdeg_ref[...]).astype(agg_ref.dtype)


def tgat_layer_aggregate(h, src, dst, t, inv_deg, w_t, b_t, *, tn, te):
    n, din = h.shape
    e_pad = src.shape[0]
    td = w_t.shape[1]
    dagg = din + td
    # TODO(synk): sweep pipeline_mode=pl.Buffered(3) on the edge-tile specs if
    # the profile shows exposed DMA (they are tiny now: (te, 1) index columns).
    return pl.pallas_call(
        _tgat_aggregate_kernel,
        out_shape=jax.ShapeDtypeStruct((n, dagg), jnp.bfloat16),
        grid_spec=pltpu.PrefetchScalarGridSpec(
            num_scalar_prefetch=0,
            grid=(n // tn, e_pad // te),
            in_specs=[pl.BlockSpec((n, din), lambda i, j: (0, 0)),    # h resident (src gather)
                      pl.BlockSpec((te, 1), lambda i, j: (j, 0)),     # src idx tile (int32)
                      pl.BlockSpec((te, 1), lambda i, j: (j, 0)),     # dst idx tile (int32)
                      pl.BlockSpec((te, 1), lambda i, j: (j, 0)),     # edge time tile
                      pl.BlockSpec((tn, 1), lambda i, j: (i, 0)),     # 1/in-degree (node tile)
                      pl.BlockSpec((1, td), lambda i, j: (0, 0)),     # w_t
                      pl.BlockSpec((1, td), lambda i, j: (0, 0))],    # b_t
            out_specs=pl.BlockSpec((tn, dagg), lambda i, j: (i, 0)),
            scratch_shapes=[pltpu.VMEM((tn, dagg), jnp.float32)],
        ),
        compiler_params=_cparams(("parallel", "arbitrary")),
    )(h, src, dst, t, inv_deg, w_t, b_t)


# ----------------------------------------------------------------------------
# Per-layer projection kernel (row-tiled, "parallel"): one wide fused matmul
#   [feat | el | er | res] = agg @ [w_fc | w_fc@w_l | w_fc@w_r | w_res]
# ----------------------------------------------------------------------------
def _layer_project_kernel(agg_ref, wbig_ref, fel_ref, er_ref, res_ref):
    hf = er_ref.shape[1]
    big = _mm(agg_ref[...], wbig_ref[...])                 # (tn, 4*HF) f32
    fel_ref[...] = big[:, :2 * hf].astype(fel_ref.dtype)   # [feat | el]
    er_ref[...] = big[:, 2 * hf:3 * hf].astype(er_ref.dtype)
    res_ref[...] = big[:, 3 * hf:]


def tgat_layer_project(agg, w_big, hf, *, tn):
    n, dagg = agg.shape
    out_shape = (
        jax.ShapeDtypeStruct((n, 2 * hf), jnp.bfloat16),   # [feat | el]
        jax.ShapeDtypeStruct((n, hf), jnp.bfloat16),       # er
        jax.ShapeDtypeStruct((n, hf), jnp.float32),        # residual projection
    )
    return pl.pallas_call(
        _layer_project_kernel,
        out_shape=out_shape,
        grid_spec=pltpu.PrefetchScalarGridSpec(
            num_scalar_prefetch=0,
            grid=(n // tn,),
            in_specs=[pl.BlockSpec((tn, dagg), lambda i: (i, 0)),
                      pl.BlockSpec((dagg, 4 * hf), lambda i: (0, 0))],
            out_specs=[pl.BlockSpec((tn, 2 * hf), lambda i: (i, 0)),
                       pl.BlockSpec((tn, hf), lambda i: (i, 0)),
                       pl.BlockSpec((tn, hf), lambda i: (i, 0))],
        ),
        compiler_params=_cparams(("parallel",)),
    )(agg, w_big)


# ----------------------------------------------------------------------------
# Layer pass B: edge softmax + attention aggregation + residual + bias + ELU.
# Grid: (node tiles "parallel", edge tiles "arbitrary").
# ----------------------------------------------------------------------------
def _tgat_attention_kernel(fel_ref, er_ref, res_ref, bias_ref, src_ref, dst_ref,
                           o_ref, acc_ref, dmat_ref):
    i = pl.program_id(0)
    j = pl.program_id(1)
    hf = er_ref.shape[1]
    tn = er_ref.shape[0]
    n_all = fel_ref.shape[0]

    @pl.when(j == 0)
    def _init():
        acc_ref[...] = jnp.zeros_like(acc_ref)
        # Loop-invariant per-destination softmax bound, hoisted out of the edge
        # loop:  m[v] = LeakyReLU(max_u el[u] + er[v]) >= every logit into v.
        el_all = fel_ref[...][:, hf:].astype(jnp.float32)              # (N, HF)
        mx_el = jnp.max(el_all, axis=0, keepdims=True)                 # (1, HF)
        er_t = er_ref[...].astype(jnp.float32)                         # (tn, HF)
        m = er_t + mx_el
        m = jnp.where(m >= 0.0, m, 0.2 * m)                            # LeakyReLU(0.2)
        # safety margin so the bf16-stored bound stays an upper bound
        m = m + jnp.abs(m) * 0.01 + 1e-6
        dmat_ref[...] = jnp.concatenate([er_t, m], axis=1).astype(dmat_ref.dtype)

    s_oh = _onehot(src_ref[...], n_all, 0)                             # (te, N)
    d_oh = _onehot(dst_ref[...], tn, i * tn)                           # (te, tn)

    sg = _mm(s_oh, fel_ref[...])                                       # (te, 2HF): [feat_src | el_src]
    dg = _mm(d_oh, dmat_ref[...])                                      # (te, 2HF): [er_dst  | m_dst ]
    ft_e = sg[:, :hf]
    el_e = sg[:, hf:]
    er_e = dg[:, :hf]
    m_e = dg[:, hf:]

    e = el_e + er_e
    e = jnp.where(e >= 0.0, e, 0.2 * e)                                # LeakyReLU(0.2)
    # in-tile destinations: e <= m_e (exact per-destination shift, no overflow);
    # out-of-tile / padded edges are clamped and their scatter column is zero.
    p = jnp.exp(jnp.minimum(e - m_e, 0.0))

    acc_ref[...] += _mtm(d_oh, jnp.concatenate([p * ft_e, p], axis=1).astype(jnp.bfloat16))

    @pl.when(j == pl.num_programs(1) - 1)
    def _finalize():
        num = acc_ref[...][:, :hf]
        den = acc_ref[...][:, hf:]
        out = num / jnp.maximum(den, 1e-30) + res_ref[...] + bias_ref[...]
        # ELU(alpha=1).  TODO(synk): switch to jnp.expm1 once Mosaic lowers it.
        out = jnp.where(out > 0.0, out, jnp.exp(jnp.minimum(out, 0.0)) - 1.0)
        o_ref[...] = out.astype(o_ref.dtype)


def tgat_layer_attention(fel, er, res, bias, src, dst, *, tn, te):
    n, hf = er.shape
    e_pad = src.shape[0]
    return pl.pallas_call(
        _tgat_attention_kernel,
        out_shape=jax.ShapeDtypeStruct((n, hf), jnp.bfloat16),
        grid_spec=pltpu.PrefetchScalarGridSpec(
            num_scalar_prefetch=0,
            grid=(n // tn, e_pad // te),
            in_specs=[pl.BlockSpec((n, 2 * hf), lambda i, j: (0, 0)),  # [feat|el] resident (src gather)
                      pl.BlockSpec((tn, hf), lambda i, j: (i, 0)),     # er   (dst node tile)
                      pl.BlockSpec((tn, hf), lambda i, j: (i, 0)),     # res  (dst node tile)
                      pl.BlockSpec((1, hf), lambda i, j: (0, 0)),      # bias
                      pl.BlockSpec((te, 1), lambda i, j: (j, 0)),      # src idx tile
                      pl.BlockSpec((te, 1), lambda i, j: (j, 0))],     # dst idx tile
            out_specs=pl.BlockSpec((tn, hf), lambda i, j: (i, 0)),
            scratch_shapes=[pltpu.VMEM((tn, 2 * hf), jnp.float32),     # [num | den] accumulator
                            pltpu.VMEM((tn, 2 * hf), jnp.bfloat16)],   # [er | m] dst-gather matrix
        ),
        compiler_params=_cparams(("parallel", "arbitrary")),
    )(fel, er, res, bias, src, dst)


# ----------------------------------------------------------------------------
# deterministic parameter construction (matches the module's shapes)
# ----------------------------------------------------------------------------
def init_params(key, in_dim, hidden_dim, out_dim, time_dim,
                num_layers, num_heads, num_classes):
    keys = iter(jax.random.split(key, 64))

    def nrm(shape, scale=0.2):
        return (scale * jax.random.normal(next(keys), shape)).astype(jnp.float32)

    def head_weight(attn, heads, f):
        # W[h*F+f, h*F+f'] = attn[h, f] (block-diagonal): keeps the per-head
        # attention scalars lane-dense, replicated across the head's F lanes.
        w4 = jnp.eye(heads, dtype=jnp.float32)[:, None, :, None] * attn[:, :, None, None]
        w4 = jnp.broadcast_to(w4, (heads, f, heads, f))
        return w4.reshape(heads * f, heads * f)

    params = {
        "proj_w": nrm((in_dim, hidden_dim)).astype(jnp.bfloat16),
        "proj_b": jnp.zeros((1, hidden_dim), jnp.float32),
    }

    layer_dims = [(hidden_dim, hidden_dim)]
    for _ in range(num_layers - 2):
        layer_dims.append((hidden_dim, hidden_dim))
    if num_layers > 1:
        layer_dims.append((hidden_dim, out_dim))

    layers = []
    for (din, dout) in layer_dims:
        f = dout // num_heads
        hf = num_heads * f
        dagg = din + time_dim
        w_fc = nrm((dagg, hf))
        w_res = nrm((dagg, hf))
        attn_l = nrm((num_heads, f))
        attn_r = nrm((num_heads, f))
        # Fuse fc / el / er / res into one wide matmul (same left operand).
        w_el = w_fc @ head_weight(attn_l, num_heads, f)
        w_er = w_fc @ head_weight(attn_r, num_heads, f)
        w_big = jnp.concatenate([w_fc, w_el, w_er, w_res], axis=1).astype(jnp.bfloat16)
        layers.append(dict(
            w_t=nrm((1, time_dim)),
            b_t=jnp.zeros((1, time_dim), jnp.float32),
            w_big=w_big,
            bias=jnp.zeros((1, hf), jnp.float32),
            hf=hf,
        ))
    params["layers"] = layers

    params["cls_w1"] = nrm((out_dim, out_dim // 2)).astype(jnp.bfloat16)
    params["cls_b1"] = jnp.zeros((1, out_dim // 2), jnp.float32)
    params["cls_w2"] = nrm((out_dim // 2, num_classes)).astype(jnp.bfloat16)
    params["cls_b2"] = jnp.zeros((1, num_classes), jnp.float32)
    return params


# ----------------------------------------------------------------------------
# full TGAT forward (eval mode: all dropouts are identity)
# ----------------------------------------------------------------------------
def tgat_forward(params, x, src, dst, times):
    n_nodes = x.shape[0]
    n_edges = src.shape[0]

    tn = min(_NODE_TILE_TARGET, _round_up(n_nodes, 8))
    n_pad = _round_up(n_nodes, tn)
    te = min(_EDGE_TILE_TARGET, _round_up(n_edges, 16))
    e_pad = _round_up(n_edges, te)

    x_p = jnp.pad(x.astype(jnp.float32), ((0, n_pad - n_nodes), (0, 0)))
    # padded edges carry src = dst = -1 -> all-zero one-hot rows -> no effect
    src_p = jnp.pad(src.astype(jnp.int32), (0, e_pad - n_edges),
                    constant_values=-1).reshape(-1, 1)
    dst_p = jnp.pad(dst.astype(jnp.int32), (0, e_pad - n_edges),
                    constant_values=-1).reshape(-1, 1)
    t_p = jnp.pad(times.astype(jnp.float32), (0, e_pad - n_edges)).reshape(-1, 1)

    # graph-only inverse in-degree (mean reduction), computed once for all layers
    deg = jnp.zeros((n_pad,), jnp.float32).at[dst.astype(jnp.int32)].add(1.0)
    inv_deg = (1.0 / jnp.maximum(deg, 1.0)).reshape(-1, 1)

    h = feat_project(x_p, params["proj_w"], params["proj_b"], tn=tn)
    for lp in params["layers"]:
        agg = tgat_layer_aggregate(h, src_p, dst_p, t_p, inv_deg,
                                   lp["w_t"], lp["b_t"], tn=tn, te=te)
        fel, er, res = tgat_layer_project(agg, lp["w_big"], lp["hf"], tn=tn)
        h = tgat_layer_attention(fel, er, res, lp["bias"], src_p, dst_p, tn=tn, te=te)
    logits = classifier_head(h, params["cls_w1"], params["cls_b1"],
                             params["cls_w2"], params["cls_b2"], tn=tn)
    return logits[:n_nodes]


if __name__ == "__main__":
    # small deterministic example graph (lane-dense dims: hidden = out = 128)
    N, E = 64, 600
    in_dim, hidden_dim, out_dim, time_dim = 16, 128, 128, 32
    num_layers, num_heads, num_classes = 2, 4, 2

    key = jax.random.PRNGKey(0)
    k_feat, k_src, k_dst, k_time, k_param = jax.random.split(key, 5)

    x = jax.random.normal(k_feat, (N, in_dim), dtype=jnp.float32)          # g.ndata['h']
    src = jax.random.randint(k_src, (E,), 0, N, dtype=jnp.int32)
    dst = jax.random.randint(k_dst, (E,), 0, N, dtype=jnp.int32)
    times = (10.0 * jax.random.uniform(k_time, (E,))).astype(jnp.float32)  # g.edata['time']

    params = init_params(k_param, in_dim, hidden_dim, out_dim, time_dim,
                         num_layers, num_heads, num_classes)

    logits = tgat_forward(params, x, src, dst, times)
    logits = jax.block_until_ready(logits)
    assert logits.shape == (N, num_classes)
    assert bool(jnp.all(jnp.isfinite(logits)))
    print("KERNEL_OK")
</pallas_src>

<mosaic_0001>
module attributes {stable_mosaic.version = 11 : i64} {
  func.func @_feat_project_kernel(%arg0: i32, %arg1: memref<64x16xf32, #tpu.memory_space<vmem>>, %arg2: memref<16x128xbf16, #tpu.memory_space<vmem>>, %arg3: memref<1x128xf32, #tpu.memory_space<vmem>>, %arg4: memref<64x128xbf16, #tpu.memory_space<vmem>>) attributes {dimension_semantics = [#tpu.dimension_semantics<parallel>], iteration_bounds = array<i64: 1>, scalar_prefetch = 0 : i64, scratch_operands = 0 : i64, tpu.core_type = #tpu.core_type<tc>, window_params = [{transform_indices = @transform_0, window_bounds = array<i64: 64, 16>}, {pipeline_mode = #tpu.pipeline_mode<synchronous>, transform_indices = @transform_1, window_bounds = array<i64: 16, 128>}, {pipeline_mode = #tpu.pipeline_mode<synchronous>, transform_indices = @transform_2, window_bounds = array<i64: 1, 128>}, {transform_indices = @transform_3, window_bounds = array<i64: 64, 128>}]} {
    %c0 = arith.constant 0 : index
    %c0_0 = arith.constant 0 : index
    %0 = vector.load %arg1[%c0, %c0_0] : memref<64x16xf32, #tpu.memory_space<vmem>>, vector<64x16xf32>
    %1 = arith.truncf %0 : vector<64x16xf32> to vector<64x16xbf16>
    %c0_1 = arith.constant 0 : index
    %c0_2 = arith.constant 0 : index
    %2 = vector.load %arg2[%c0_1, %c0_2] : memref<16x128xbf16, #tpu.memory_space<vmem>>, vector<16x128xbf16>
    %cst = arith.constant dense<0.000000e+00> : vector<64x128xf32>
    %3 = tpu.matmul %1, %2, %cst {dimension_numbers = #tpu.dot_dimension_numbers<[1], [0], [0], [1], [0, 0, 1, 1], [], []>} : vector<64x16xbf16>, vector<16x128xbf16>, vector<64x128xf32> -> vector<64x128xf32>
    %c0_3 = arith.constant 0 : index
    %c0_4 = arith.constant 0 : index
    %4 = vector.load %arg3[%c0_3, %c0_4] : memref<1x128xf32, #tpu.memory_space<vmem>>, vector<1x128xf32>
    %5 = vector.broadcast %4 : vector<1x128xf32> to vector<64x128xf32>
    %6 = arith.addf %3, %5 : vector<64x128xf32>
    %7 = arith.truncf %6 : vector<64x128xf32> to vector<64x128xbf16>
    %c0_5 = arith.constant 0 : index
    %c0_6 = arith.constant 0 : index
    %8 = vector.load %arg4[%c0_5, %c0_6] : memref<64x128xbf16, #tpu.memory_space<vmem>>, vector<64x128xbf16>
    tpu.vector_store %arg4[%c0_5, %c0_6], %7 {strides = array<i32>} : memref<64x128xbf16, #tpu.memory_space<vmem>>, vector<64x128xbf16>,
    return
  }
  func.func @transform_0(%arg0: i32) -> (i32, i32) {
    %c0_i32 = arith.constant 0 : i32
    %c0_i32_0 = arith.constant 0 : i32
    return %arg0, %c0_i32 : i32, i32
  }
  func.func @transform_1(%arg0: i32) -> (i32, i32) {
    %c0_i32 = arith.constant 0 : i32
    %c0_i32_0 = arith.constant 0 : i32
    %c0_i32_1 = arith.constant 0 : i32
    return %c0_i32, %c0_i32_0 : i32, i32
  }
  func.func @transform_2(%arg0: i32) -> (i32, i32) {
    %c0_i32 = arith.constant 0 : i32
    %c0_i32_0 = arith.constant 0 : i32
    %c0_i32_1 = arith.constant 0 : i32
    return %c0_i32, %c0_i32_0 : i32, i32
  }
  func.func @transform_3(%arg0: i32) -> (i32, i32) {
    %c0_i32 = arith.constant 0 : i32
    %c0_i32_0 = arith.constant 0 : i32
    return %arg0, %c0_i32 : i32, i32
  }
}

</mosaic_0001>

<bundles_post_ra>
// kernel: tpu_custom_call.1
= control target key start
LH: loop header
LB: loop body
LE: loop exit
PB: predicated region body
PF: predicated region fallthrough
CT: control target
= control target key end

     0   :  { %vm43_vm0 = vcmask 130048   ;;  %s325_s0 = inlined_call_operand.vmem [shape: f32[64,16], index: 0, kind: input, shape index: {}]   ;;  %s326_s1 = inlined_call_operand.vmem [shape: bf16[16,128], index: 1, kind: input, shape index: {}]   ;;  %s327_s2 = inlined_call_operand.vmem [shape: f32[1,128], index: 2, kind: input, shape index: {}]   ;;  %s328_s3 = inlined_call_operand.hbm [shape: bf16[64,128], index: 3, kind: output, shape index: {}]  }
   0x1   :  { %v242_v0 = vld [vmem:[%s326_s1] sm:$0xff]   ;;  %v17_v2 = vld [vmem:[%s325_s0 + $0x8] sm:$0xff]  ;;  %v18_v6 = vld [vmem:[%s325_s0 + $0x10] sm:$0xff] }
   0x2   :  { %v16_v1 = vld [vmem:[%s325_s0] sm:$0xff]  ;;  %227 = vmatprep.subr.bf16.mxu0 %v242_v0  ;;  %237 = vmatprep.subr.bf16.mxu1 %v242_v0  ;;  %v21_v5 = vld [vmem:[%s325_s0 + $0x28] sm:$0xff]  ;;  %v19_v7 = vld [vmem:[%s325_s0 + $0x18] sm:$0xff] }
   0x3   :  { %v20_v3 = vld [vmem:[%s325_s0 + $0x20] sm:$0xff]  ;;  %v24_v4 = vpack.c.bf16 %v17_v2, %v16_v1  ;;  %228 = vmatpush3.bf16.msra.mxu0 %v242_v0  ;;  %238 = vmatpush3.bf16.msra.mxu1 %v242_v0  ;;  %v25_v9 = vpack.c.bf16 %v19_v7, %v18_v6  ;;  %v22_v10 = vld [vmem:[%s325_s0 + $0x30] sm:$0xff]  ;;  %v23_v11 = vld [vmem:[%s325_s0 + $0x38] sm:$0xff] }
   0x4   :  { %v26_v8 = vpack.c.bf16 %v21_v5, %v20_v3 }
   0x5   :  { %8 = vsyncpa [#allocation3], 0  ;;  %229 = vmatprep.mubr.msk.bf16.mxu0 %vm43_vm0, %v24_v4  ;;  %v27_v12 = vpack.c.bf16 %v23_v11, %v22_v10  ;;  %v177_v15 = vld [vmem:[%s327_s2] ss:$0 sm:$0xff]  ;;  %s265_s0 = smov [#allocation2]  }
   0x6   :  { %233 = vmatprep.mubr.msk.bf16.mxu1 %vm43_vm0, %v26_v8  ;;  %230 = vmatmul.mubr.msk.bf16.vlgmr.msra.gmra.mxu0 %vm43_vm0, %v25_v9  ;;  %s166_s4 = sshll.u32 %s265_s0, 4  ;;  %s167_s4 = int_to_ptr.vmem [resolvable:$true] %s166_s4 }
   0x7   :  { %234 = vmatmul.mubr.msk.bf16.vlgmr.msra.gmra.mxu1 %vm43_vm0, %v27_v12  ;;  %s243_s2 = scalar_lea.vmem %s167_s4, 512  ;;  %p248_p1 = scmp.lt.s32.totalorder %s167_s4, %s167_s4 }
   0x8   :  { %p244_p0 = scmp.ne.s32.totalorder %s167_s4, %s243_s2  ;;  %p249_p2 = scmp.lt.s32.totalorder %s243_s2, %s243_s2 }
   0xa   :  { %p250_p3 = por %p249_p2, %p248_p1 }
   0xc   :  { %p251_p4 = pnand %p250_p3, %p244_p0 }
  0xc6   :  { %v231_v13 = vpop.f32.mrf.mxu0 }
  0xc7   :  { %v235_v14 = vpop.f32.mrf.mxu1  ;;  %v99_v20 = vadd.f32 %v231_v13, %v177_v15 }
  0xc8   :  { %v90_v16 = vpop.f32.mrf.mxu0  ;;  %v115_v21 = vadd.f32 %v235_v14, %v177_v15 }
  0xc9   :  { %v106_v17 = vpop.f32.mrf.mxu1  ;;  %v91_v24 = vadd.f32 %v177_v15, %v90_v16 }
  0xca   :  { %v232_v18 = vpop.f32.mrf.mxu0  ;;  %v107_v25 = vadd.f32 %v177_v15, %v106_v17 }
  0xcb   :  { %v236_v19 = vpop.f32.mrf.mxu1  ;;  %v102_v22 = vadd.f32 %v232_v18, %v177_v15 }
  0xcc   :  { %v118_v23 = vadd.f32 %v236_v19, %v177_v15  ;;  %v93_v26 = vpop.f32.mrf.mxu0 }
  0xcd   :  { %v109_v27 = vpop.f32.mrf.mxu1  ;;  %v207_v28 = vpack.c.bf16 %v102_v22, %v99_v20  ;;  %v94_v30 = vadd.f32 %v177_v15, %v93_v26 }
  0xce   :  { %v217_v29 = vpack.c.bf16 %v118_v23, %v115_v21  ;;  %v110_v31 = vadd.f32 %v177_v15, %v109_v27 }
  0xcf   :  { %219 = vst [vmem:[#allocation2 + $0x8] sm:$0xff] %v207_v28   ;;  %v202_v32 = vpack.c.bf16 %v94_v30, %v91_v24 }
  0xd0   :  { %221 = vst [vmem:[#allocation2 + $0x18] sm:$0xff] %v217_v29   ;;  %v212_v33 = vpack.c.bf16 %v110_v31, %v107_v25 }
  0xd1   :  { %203 = vst [vmem:[#allocation2] sm:$0xff] %v202_v32  }
  0xd2   :  { %220 = vst [vmem:[#allocation2 + $0x10] sm:$0xff] %v212_v33  }
  0xd3   :  { %254 = shalt.err (!%p251_p4)
}
  0xd4   :  { %s266_s5 = smov 64   ;;  %s267_s6 = smov 4  }
  0xd5   :  { %172 = dma.vmem_to_hbm [thread:$0]  %s167_s4, 512, %s328_s3, [#allocation3], %s266_s5, %s266_s5, %s267_s6  }
  0xd6   :  { %263 = dma.done.wait [#allocation3], 512  }
  0xd7   :  { %264 = vsyncadd [#allocation3], 4294966784 }
  0xd8   :  { %176 = vsyncpa [#allocation3], 1 }

</bundles_post_ra>
